<compile_context>
chip_gen: v5e
topology: v5e:2x2
jax: 0.10.0
libtpu: 0.0.40
codegen_flags: <defaults>
</compile_context>

<pallas_src>
import jax
import jax.numpy as jnp
from jax.experimental import pallas as pl
from jax.experimental.pallas import tpu as pltpu


# ----------------------------------------------------------------------------
# IdentityEncoder: zero-copy.
# ----------------------------------------------------------------------------
def identity_encoder(x):
    return x


# ----------------------------------------------------------------------------
# Fused Actor MLP + log-softmax kernel (SAC.forward hot path).
# ----------------------------------------------------------------------------
def _actor_kernel(s_ref, w1_ref, b1_ref, w2_ref, b2_ref, w3_ref, b3_ref, lp_ref):
    # bf16 MXU operands, f32 accumulation (biases are f32).
    x = s_ref[...].astype(jnp.bfloat16)

    h1 = jnp.dot(x, w1_ref[...], preferred_element_type=jnp.float32) + b1_ref[...]
    h1 = jnp.maximum(h1, 0.0)

    h2 = jnp.dot(h1.astype(jnp.bfloat16), w2_ref[...],
                 preferred_element_type=jnp.float32) + b2_ref[...]
    h2 = jnp.maximum(h2, 0.0)

    logits = jnp.dot(h2.astype(jnp.bfloat16), w3_ref[...],
                     preferred_element_type=jnp.float32) + b3_ref[...]

    # Numerically stable log-softmax over the action (last) dim.
    m = jnp.max(logits, axis=-1, keepdims=True)
    shifted = logits - m
    lse = jnp.log(jnp.sum(jnp.exp(shifted), axis=-1, keepdims=True))
    lp_ref[...] = (shifted - lse).astype(lp_ref.dtype)


def sac_forward(state, params, *, block_b=2048):
    """Returns log P(a | s): the Categorical parameters for SAC.forward(state)."""
    w1, b1, w2, b2, w3, b3 = params
    B, S = state.shape
    H = w1.shape[1]
    A = w3.shape[1]

    # Weights -> bf16 once (tiny, one-time); biases stay f32 (added to the
    # f32 accumulator), reshaped to lane-dense (1, N) rows.
    w1 = w1.astype(jnp.bfloat16)
    w2 = w2.astype(jnp.bfloat16)
    w3 = w3.astype(jnp.bfloat16)
    b1 = b1.reshape(1, H).astype(jnp.float32)
    b2 = b2.reshape(1, H).astype(jnp.float32)
    b3 = b3.reshape(1, A).astype(jnp.float32)

    # Batch tiling: no pad, no slice.  Small B -> single full-extent block
    # (full dims always satisfy the (8,128) rule).  Large B -> big tiles
    # (multiple of 8) and at least 2 grid steps so both v7x TensorCores get
    # work; the partial last block is handled by Pallas.
    if B <= 512:
        tile_b = B
    else:
        n_steps = max(2, -(-B // block_b))
        tile_b = min(block_b, ((-(-B // n_steps) + 7) // 8) * 8)
    grid = (pl.cdiv(B, tile_b),)

    log_probs = pl.pallas_call(
        _actor_kernel,
        out_shape=jax.ShapeDtypeStruct((B, A), jnp.float32),
        grid_spec=pltpu.PrefetchScalarGridSpec(
            num_scalar_prefetch=0,
            grid=grid,
            in_specs=[
                pl.BlockSpec((tile_b, S), lambda i: (i, 0)),  # state tile
                pl.BlockSpec((S, H), lambda i: (0, 0)),       # W1 (VMEM-resident)
                pl.BlockSpec((1, H), lambda i: (0, 0)),       # b1
                pl.BlockSpec((H, H), lambda i: (0, 0)),       # W2
                pl.BlockSpec((1, H), lambda i: (0, 0)),       # b2
                pl.BlockSpec((H, A), lambda i: (0, 0)),       # W3
                pl.BlockSpec((1, A), lambda i: (0, 0)),       # b3
            ],
            out_specs=pl.BlockSpec((tile_b, A), lambda i: (i, 0)),
        ),
        compiler_params=pltpu.CompilerParams(
            dimension_semantics=("parallel",),
            vmem_limit_bytes=32 * 1024 * 1024,
        ),
    )(state, w1, b1, w2, b2, w3, b3)

    return log_probs


def sac_probs(state, params, **kw):
    """Matches policy.probs of the PyTorch module."""
    return jnp.exp(sac_forward(state, params, **kw))


def sac_act(key, state, params):
    """SAC.act: encode (identity), compute policy, sample from Categorical."""
    s = identity_encoder(state)
    log_probs = sac_forward(s, params)
    return jax.random.categorical(key, log_probs, axis=-1)


def sac_act_deterministic(state, params):
    """SAC.act_deterministic: argmax of the policy."""
    s = identity_encoder(state)
    return jnp.argmax(sac_forward(s, params), axis=-1)


# ----------------------------------------------------------------------------
# Pure-JAX f32 reference (mirrors the PyTorch Actor forward) for validation.
# ----------------------------------------------------------------------------
def _reference_probs(state, params):
    w1, b1, w2, b2, w3, b3 = params
    h1 = jnp.maximum(state @ w1 + b1, 0.0)
    h2 = jnp.maximum(h1 @ w2 + b2, 0.0)
    logits = h2 @ w3 + b3
    return jax.nn.softmax(logits, axis=-1)


def _xavier_uniform(key, fan_in, fan_out, dtype=jnp.float32):
    limit = (6.0 / (fan_in + fan_out)) ** 0.5
    return jax.random.uniform(key, (fan_in, fan_out), dtype, -limit, limit)


if __name__ == "__main__":
    key = jax.random.PRNGKey(0)
    k_s, k_s2, k1, k2, k3, k_act = jax.random.split(key, 6)

    batch, state_dims, hidden_dims, action_dims = 2, 16, 256, 4

    # weight_init_: xavier-uniform weights, biases = 0.01 (as in the module).
    params = (
        _xavier_uniform(k1, state_dims, hidden_dims),
        jnp.full((hidden_dims,), 0.01, jnp.float32),
        _xavier_uniform(k2, hidden_dims, hidden_dims),
        jnp.full((hidden_dims,), 0.01, jnp.float32),
        _xavier_uniform(k3, hidden_dims, action_dims),
        jnp.full((action_dims,), 0.01, jnp.float32),
    )

    state = jax.random.normal(k_s, (batch, state_dims), dtype=jnp.float32)

    # Identity encoder: pure pass-through (zero bytes moved).
    enc = identity_encoder(state)
    assert enc is state

    # SAC.forward -> Categorical log-probs via the fused Pallas kernel.
    log_probs = jax.block_until_ready(sac_forward(enc, params))
    probs = jnp.exp(log_probs)
    ref = _reference_probs(state, params)

    assert log_probs.shape == (batch, action_dims), log_probs.shape
    # bf16 MXU operands vs the f32 reference -> loose tolerance.
    assert bool(jnp.allclose(probs, ref, rtol=5e-2, atol=2e-2)), "probs mismatch"
    assert bool(jnp.allclose(jnp.sum(probs, axis=-1), 1.0, atol=1e-4)), "probs not normalized"

    # SAC.act: sample actions from the Categorical (logits path, no jnp.log).
    actions = jax.block_until_ready(sac_act(k_act, state, params))
    assert actions.shape == (batch,)
    assert bool(jnp.all((actions >= 0) & (actions < action_dims)))

    det_actions = jax.block_until_ready(sac_act_deterministic(state, params))
    assert det_actions.shape == (batch,)

    # Exercise the multi-step / partial-last-block path (no pad, no slice).
    big_b = 600
    state_big = jax.random.normal(k_s2, (big_b, state_dims), dtype=jnp.float32)
    lp_big = jax.block_until_ready(sac_forward(state_big, params))
    probs_big = jnp.exp(lp_big)
    ref_big = _reference_probs(state_big, params)
    assert lp_big.shape == (big_b, action_dims)
    assert bool(jnp.allclose(probs_big, ref_big, rtol=5e-2, atol=2e-2)), "big-batch mismatch"
    assert bool(jnp.allclose(jnp.sum(probs_big, axis=-1), 1.0, atol=1e-4))

    print("KERNEL_OK")
</pallas_src>

<mosaic_0001>
module attributes {stable_mosaic.version = 11 : i64} {
  func.func @_actor_kernel(%arg0: i32, %arg1: memref<2x16xf32, #tpu.memory_space<vmem>>, %arg2: memref<16x256xbf16, #tpu.memory_space<vmem>>, %arg3: memref<1x256xf32, #tpu.memory_space<vmem>>, %arg4: memref<256x256xbf16, #tpu.memory_space<vmem>>, %arg5: memref<1x256xf32, #tpu.memory_space<vmem>>, %arg6: memref<256x4xbf16, #tpu.memory_space<vmem>>, %arg7: memref<1x4xf32, #tpu.memory_space<vmem>>, %arg8: memref<2x4xf32, #tpu.memory_space<vmem>>) attributes {dimension_semantics = [#tpu.dimension_semantics<parallel>], iteration_bounds = array<i64: 1>, scalar_prefetch = 0 : i64, scratch_operands = 0 : i64, tpu.core_type = #tpu.core_type<tc>, window_params = [{transform_indices = @transform_0, window_bounds = array<i64: 2, 16>}, {pipeline_mode = #tpu.pipeline_mode<synchronous>, transform_indices = @transform_1, window_bounds = array<i64: 16, 256>}, {pipeline_mode = #tpu.pipeline_mode<synchronous>, transform_indices = @transform_2, window_bounds = array<i64: 1, 256>}, {pipeline_mode = #tpu.pipeline_mode<synchronous>, transform_indices = @transform_3, window_bounds = array<i64: 256, 256>}, {pipeline_mode = #tpu.pipeline_mode<synchronous>, transform_indices = @transform_4, window_bounds = array<i64: 1, 256>}, {pipeline_mode = #tpu.pipeline_mode<synchronous>, transform_indices = @transform_5, window_bounds = array<i64: 256, 4>}, {pipeline_mode = #tpu.pipeline_mode<synchronous>, transform_indices = @transform_6, window_bounds = array<i64: 1, 4>}, {transform_indices = @transform_7, window_bounds = array<i64: 2, 4>}]} {
    %c0 = arith.constant 0 : index
    %c0_0 = arith.constant 0 : index
    %0 = vector.load %arg1[%c0, %c0_0] : memref<2x16xf32, #tpu.memory_space<vmem>>, vector<2x16xf32>
    %1 = arith.truncf %0 : vector<2x16xf32> to vector<2x16xbf16>
    %c0_1 = arith.constant 0 : index
    %c0_2 = arith.constant 0 : index
    %2 = vector.load %arg2[%c0_1, %c0_2] : memref<16x256xbf16, #tpu.memory_space<vmem>>, vector<16x256xbf16>
    %cst = arith.constant dense<0.000000e+00> : vector<2x256xf32>
    %3 = tpu.matmul %1, %2, %cst {dimension_numbers = #tpu.dot_dimension_numbers<[1], [0], [0], [1], [0, 0, 1, 1], [], []>} : vector<2x16xbf16>, vector<16x256xbf16>, vector<2x256xf32> -> vector<2x256xf32>
    %c0_3 = arith.constant 0 : index
    %c0_4 = arith.constant 0 : index
    %4 = vector.load %arg3[%c0_3, %c0_4] : memref<1x256xf32, #tpu.memory_space<vmem>>, vector<1x256xf32>
    %5 = vector.broadcast %4 : vector<1x256xf32> to vector<2x256xf32>
    %6 = arith.addf %3, %5 : vector<2x256xf32>
    %cst_5 = arith.constant 0.000000e+00 : f32
    %7 = vector.broadcast %cst_5 : f32 to vector<2x256xf32>
    %8 = arith.maximumf %6, %7 : vector<2x256xf32>
    %9 = arith.truncf %8 : vector<2x256xf32> to vector<2x256xbf16>
    %c0_6 = arith.constant 0 : index
    %c0_7 = arith.constant 0 : index
    %10 = vector.load %arg4[%c0_6, %c0_7] : memref<256x256xbf16, #tpu.memory_space<vmem>>, vector<256x256xbf16>
    %cst_8 = arith.constant dense<0.000000e+00> : vector<2x256xf32>
    %11 = tpu.matmul %9, %10, %cst_8 {dimension_numbers = #tpu.dot_dimension_numbers<[1], [0], [0], [1], [0, 0, 1, 1], [], []>} : vector<2x256xbf16>, vector<256x256xbf16>, vector<2x256xf32> -> vector<2x256xf32>
    %c0_9 = arith.constant 0 : index
    %c0_10 = arith.constant 0 : index
    %12 = vector.load %arg5[%c0_9, %c0_10] : memref<1x256xf32, #tpu.memory_space<vmem>>, vector<1x256xf32>
    %13 = vector.broadcast %12 : vector<1x256xf32> to vector<2x256xf32>
    %14 = arith.addf %11, %13 : vector<2x256xf32>
    %cst_11 = arith.constant 0.000000e+00 : f32
    %15 = vector.broadcast %cst_11 : f32 to vector<2x256xf32>
    %16 = arith.maximumf %14, %15 : vector<2x256xf32>
    %17 = arith.truncf %16 : vector<2x256xf32> to vector<2x256xbf16>
    %c0_12 = arith.constant 0 : index
    %c0_13 = arith.constant 0 : index
    %18 = vector.load %arg6[%c0_12, %c0_13] : memref<256x4xbf16, #tpu.memory_space<vmem>>, vector<256x4xbf16>
    %cst_14 = arith.constant dense<0.000000e+00> : vector<2x4xf32>
    %19 = tpu.matmul %17, %18, %cst_14 {dimension_numbers = #tpu.dot_dimension_numbers<[1], [0], [0], [1], [0, 0, 1, 1], [], []>} : vector<2x256xbf16>, vector<256x4xbf16>, vector<2x4xf32> -> vector<2x4xf32>
    %c0_15 = arith.constant 0 : index
    %c0_16 = arith.constant 0 : index
    %20 = vector.load %arg7[%c0_15, %c0_16] : memref<1x4xf32, #tpu.memory_space<vmem>>, vector<1x4xf32>
    %21 = vector.broadcast %20 : vector<1x4xf32> to vector<2x4xf32>
    %22 = arith.addf %19, %21 : vector<2x4xf32>
    %cst_17 = arith.constant dense<0xFF800000> : vector<2xf32>
    %23 = vector.multi_reduction <maximumf>, %22, %cst_17 [1] : vector<2x4xf32> to vector<2xf32>
    %24 = vector.shape_cast %23 : vector<2xf32> to vector<2x1xf32>
    %25 = vector.broadcast %24 : vector<2x1xf32> to vector<2x4xf32>
    %26 = arith.subf %22, %25 : vector<2x4xf32>
    %27 = math.exp %26 : vector<2x4xf32>
    %cst_18 = arith.constant dense<0.000000e+00> : vector<2xf32>
    %28 = vector.multi_reduction <add>, %27, %cst_18 [1] : vector<2x4xf32> to vector<2xf32>
    %29 = vector.shape_cast %28 : vector<2xf32> to vector<2x1xf32>
    %30 = math.log %29 : vector<2x1xf32>
    %31 = vector.broadcast %30 : vector<2x1xf32> to vector<2x4xf32>
    %32 = arith.subf %26, %31 : vector<2x4xf32>
    %c0_19 = arith.constant 0 : index
    %c0_20 = arith.constant 0 : index
    %33 = vector.load %arg8[%c0_19, %c0_20] : memref<2x4xf32, #tpu.memory_space<vmem>>, vector<2x4xf32>
    tpu.vector_store %arg8[%c0_19, %c0_20], %32 {strides = array<i32>} : memref<2x4xf32, #tpu.memory_space<vmem>>, vector<2x4xf32>,
    return
  }
  func.func @transform_0(%arg0: i32) -> (i32, i32) {
    %c0_i32 = arith.constant 0 : i32
    %c0_i32_0 = arith.constant 0 : i32
    return %arg0, %c0_i32 : i32, i32
  }
  func.func @transform_1(%arg0: i32) -> (i32, i32) {
    %c0_i32 = arith.constant 0 : i32
    %c0_i32_0 = arith.constant 0 : i32
    %c0_i32_1 = arith.constant 0 : i32
    return %c0_i32, %c0_i32_0 : i32, i32
  }
  func.func @transform_2(%arg0: i32) -> (i32, i32) {
    %c0_i32 = arith.constant 0 : i32
    %c0_i32_0 = arith.constant 0 : i32
    %c0_i32_1 = arith.constant 0 : i32
    return %c0_i32, %c0_i32_0 : i32, i32
  }
  func.func @transform_3(%arg0: i32) -> (i32, i32) {
    %c0_i32 = arith.constant 0 : i32
    %c0_i32_0 = arith.constant 0 : i32
    %c0_i32_1 = arith.constant 0 : i32
    return %c0_i32, %c0_i32_0 : i32, i32
  }
  func.func @transform_4(%arg0: i32) -> (i32, i32) {
    %c0_i32 = arith.constant 0 : i32
    %c0_i32_0 = arith.constant 0 : i32
    %c0_i32_1 = arith.constant 0 : i32
    return %c0_i32, %c0_i32_0 : i32, i32
  }
  func.func @transform_5(%arg0: i32) -> (i32, i32) {
    %c0_i32 = arith.constant 0 : i32
    %c0_i32_0 = arith.constant 0 : i32
    %c0_i32_1 = arith.constant 0 : i32
    return %c0_i32, %c0_i32_0 : i32, i32
  }
  func.func @transform_6(%arg0: i32) -> (i32, i32) {
    %c0_i32 = arith.constant 0 : i32
    %c0_i32_0 = arith.constant 0 : i32
    %c0_i32_1 = arith.constant 0 : i32
    return %c0_i32, %c0_i32_0 : i32, i32
  }
  func.func @transform_7(%arg0: i32) -> (i32, i32) {
    %c0_i32 = arith.constant 0 : i32
    %c0_i32_0 = arith.constant 0 : i32
    return %arg0, %c0_i32 : i32, i32
  }
}

</mosaic_0001>

<bundles_post_ra>
// kernel: tpu_custom_call.1
= control target key start
LH: loop header
LB: loop body
LE: loop exit
PB: predicated region body
PF: predicated region fallthrough
CT: control target
= control target key end

     0   :  { %12 = vsyncpa [#allocation3], 0  ;;  %s981_s0 = inlined_call_operand.vmem [shape: f32[2,16], index: 0, kind: input, shape index: {}]   ;;  %s982_s1 = inlined_call_operand.vmem [shape: bf16[16,256], index: 1, kind: input, shape index: {}]   ;;  %s983_s2 = inlined_call_operand.vmem [shape: f32[1,256], index: 2, kind: input, shape index: {}]   ;;  %s984_s3 = inlined_call_operand.hbm [shape: bf16[256,256], index: 3, kind: input, shape index: {}]   ;;  %s985_s4 = inlined_call_operand.vmem [shape: f32[1,256], index: 4, kind: input, shape index: {}]   ;;  %s986_s5 = inlined_call_operand.vmem [shape: bf16[256,4], index: 5, kind: input, shape index: {}]   ;;  %s987_s6 = inlined_call_operand.vmem [shape: f32[1,4], index: 6, kind: input, shape index: {}]   ;;  %s988_s7 = inlined_call_operand.hbm [shape: f32[2,4], index: 7, kind: output, shape index: {}]  }
   0x1   :  { %13 = vsyncpa [#allocation4], 0  ;;  %s24_s26 = sshll.u32 %s984_s3, 4  ;;  %s854_s27 = smov [#allocation2]   ;;  %s25_s26 = int_to_ptr.hbm [resolvable:$true] %s24_s26 }
   0x2   :  { %s26_s28 = sshll.u32 %s854_s27, 4  ;;  %s855_s29 = smov 128   ;;  %s27_s28 = int_to_ptr.vmem [resolvable:$true] %s26_s28 }
   0x3   :  { %s856_s30 = smov 8  }
   0x4   :  { %32 = dma.hbm_to_vmem [thread:$0]  %s25_s26, 4096, %s27_s28, [#allocation3], %s855_s29, %s855_s29, %s856_s30  }
   0x5   :  { %850 = dma.done.wait [#allocation3], 4096  }
   0x6   :  { %851 = vsyncadd [#allocation3], 4294963200  ;;  %vm64_vm0 = vcmask 130048   ;;  %v543_v0 = vld [vmem:[%s982_s1] sm:$0xf]  ;;  %vm510_vm1 = vcmask 25600  }
   0x7   :  { %v744_v1 = vld [vmem:[%s982_s1 + $0x4] sm:$0xf0]  ;;  %v743_v2 = vld [vmem:[%s982_s1 + $0x4] sm:$0xf]  ;;  %v545_v4 = vld [vmem:[%s982_s1 + $0x8] sm:$0xf0] }
   0x8   :  { %v544_v3 = vor.u32 %v744_v1, %v543_v0  ;;  %v44_v5 = vld [vmem:[%s981_s0] sm:$0x3]  ;;  %v609_v6 = vld [vmem:[#allocation2 + $0x70] sm:$0xf]  ;;  %v548_v7 = vor.u32 %v743_v2, %v545_v4  ;;  %v760_v9 = vld [vmem:[#allocation2 + $0x74] sm:$0xf0] }
   0x9   :  { %v45_v8 = vpack.c.bf16 %v44_v5, %v44_v5  ;;  %v673_v10 = vld [vmem:[#allocation2 + $0xf0] sm:$0xf]  ;;  %v776_v11 = vld [vmem:[#allocation2 + $0xf4] sm:$0xf0]  ;;  %v610_v12 = vor.u32 %v760_v9, %v609_v6  ;;  %v759_v14 = vld [vmem:[#allocation2 + $0x74] sm:$0xf] }
   0xa   :  { %75 = vmatpush.bf16.msra.mxu0 %v544_v3  ;;  %v674_v13 = vor.u32 %v776_v11, %v673_v10  ;;  %v611_v15 = vld [vmem:[#allocation2 + $0x78] sm:$0xf0]  ;;  %v775_v16 = vld [vmem:[#allocation2 + $0xf4] sm:$0xf]  ;;  %88 = vmatpush.bf16.msra.mxu1 %v548_v7  ;;  %v601_v19 = vld [vmem:[#allocation2 + $0x60] sm:$0xf] }
   0xb   :  { %v614_v17 = vor.u32 %v759_v14, %v611_v15  ;;  %v675_v18 = vld [vmem:[#allocation2 + $0xf8] sm:$0xf0]  ;;  %v758_v20 = vld [vmem:[#allocation2 + $0x64] sm:$0xf0]  ;;  %296 = vmatpush.bf16.msra.mxu2 %v610_v12  ;;  %v665_v23 = vld [vmem:[#allocation2 + $0xe0] sm:$0xf] }
   0xc   :  { %309 = vmatpush.bf16.msra.mxu3 %v674_v13  ;;  %v678_v21 = vor.u32 %v775_v16, %v675_v18  ;;  %v602_v22 = vor.u32 %v758_v20, %v601_v19  ;;  %v774_v24 = vld [vmem:[#allocation2 + $0xe4] sm:$0xf0]  ;;  %v757_v25 = vld [vmem:[#allocation2 + $0x64] sm:$0xf]  ;;  %v603_v27 = vld [vmem:[#allocation2 + $0x68] sm:$0xf0] }
   0xd   :  { %549 = vmatmul.msk.bf16.vlgmr.msra.gmra.mxu0 %vm64_vm0, %v45_v8  ;;  %v666_v26 = vor.u32 %v774_v24, %v665_v23  ;;  %v773_v28 = vld [vmem:[#allocation2 + $0xe4] sm:$0xf]  ;;  %v667_v29 = vld [vmem:[#allocation2 + $0xe8] sm:$0xf0]  ;;  %550 = vmatmul.msk.bf16.vlgmr.msra.gmra.mxu1 %vm64_vm0, %v45_v8  ;;  %v606_v30 = vor.u32 %v757_v25, %v603_v27  ;;  %v593_v31 = vld [vmem:[#allocation2 + $0x50] sm:$0xf] }
   0xe   :  { %322 = vmatpush.bf16.msrb.mxu0 %v614_v17  ;;  %v756_v32 = vld [vmem:[#allocation2 + $0x54] sm:$0xf0]  ;;  %v657_v33 = vld [vmem:[#allocation2 + $0xd0] sm:$0xf]  ;;  %335 = vmatpush.bf16.msrb.mxu1 %v678_v21  ;;  %v670_v34 = vor.u32 %v773_v28, %v667_v29  ;;  %v755_v36 = vld [vmem:[#allocation2 + $0x54] sm:$0xf] }
   0xf   :  { %v772_v35 = vld [vmem:[#allocation2 + $0xd4] sm:$0xf0]  ;;  %v595_v37 = vld [vmem:[#allocation2 + $0x58] sm:$0xf0]  ;;  %297 = vmatpush.bf16.msra.mxu2 %v602_v22  ;;  %v594_v38 = vor.u32 %v756_v32, %v593_v31  ;;  %v771_v40 = vld [vmem:[#allocation2 + $0xd4] sm:$0xf] }
  0x10   :  { %310 = vmatpush.bf16.msra.mxu3 %v666_v26  ;;  %v658_v39 = vor.u32 %v772_v35, %v657_v33  ;;  %v659_v41 = vld [vmem:[#allocation2 + $0xd8] sm:$0xf0]  ;;  %v585_v42 = vld [vmem:[#allocation2 + $0x40] sm:$0xf]  ;;  %v754_v43 = vld [vmem:[#allocation2 + $0x44] sm:$0xf0]  ;;  %v598_v46 = vor.u32 %v755_v36, %v595_v37 }
  0x11   :  { %v649_v44 = vld [vmem:[#allocation2 + $0xc0] sm:$0xf]  ;;  %v770_v45 = vld [vmem:[#allocation2 + $0xc4] sm:$0xf0]  ;;  %v662_v47 = vor.u32 %v771_v40, %v659_v41  ;;  %v753_v48 = vld [vmem:[#allocation2 + $0x44] sm:$0xf]  ;;  %v586_v50 = vor.u32 %v754_v43, %v585_v42 }
  0x12   :  { %323 = vmatpush.bf16.msrb.mxu0 %v606_v30  ;;  %336 = vmatpush.bf16.msrb.mxu1 %v670_v34  ;;  %v587_v49 = vld [vmem:[#allocation2 + $0x48] sm:$0xf0]  ;;  %v650_v51 = vor.u32 %v770_v45, %v649_v44  ;;  %v769_v52 = vld [vmem:[#allocation2 + $0xc4] sm:$0xf]  ;;  %v577_v54 = vld [vmem:[#allocation2 + $0x30] sm:$0xf] }
  0x13   :  { %298 = vmatpush.bf16.msra.mxu2 %v594_v38  ;;  %v651_v53 = vld [vmem:[#allocation2 + $0xc8] sm:$0xf0]  ;;  %v752_v55 = vld [vmem:[#allocation2 + $0x34] sm:$0xf0]  ;;  %v641_v56 = vld [vmem:[#allocation2 + $0xb0] sm:$0xf]  ;;  %v590_v58 = vor.u32 %v753_v48, %v587_v49 }
  0x14   :  { %311 = vmatpush.bf16.msra.mxu3 %v658_v39  ;;  %v768_v57 = vld [vmem:[#allocation2 + $0xb4] sm:$0xf0]  ;;  %v654_v59 = vor.u32 %v769_v52, %v651_v53  ;;  %v751_v60 = vld [vmem:[#allocation2 + $0x34] sm:$0xf]  ;;  %v579_v61 = vld [vmem:[#allocation2 + $0x38] sm:$0xf0]  ;;  %v578_v63 = vor.u32 %v752_v55, %v577_v54 }
  0x15   :  { %v767_v62 = vld [vmem:[#allocation2 + $0xb4] sm:$0xf]  ;;  %v642_v0 = vor.u32 %v768_v57, %v641_v56  ;;  %v643_v1 = vld [vmem:[#allocation2 + $0xb8] sm:$0xf0]  ;;  %v569_v2 = vld [vmem:[#allocation2 + $0x20] sm:$0xf]  ;;  %v582_v6 = vor.u32 %v751_v60, %v579_v61 }
  0x16   :  { %324 = vmatpush.bf16.msrb.mxu0 %v598_v46  ;;  %337 = vmatpush.bf16.msrb.mxu1 %v662_v47  ;;  %v750_v3 = vld [vmem:[#allocation2 + $0x24] sm:$0xf0]  ;;  %v633_v4 = vld [vmem:[#allocation2 + $0xa0] sm:$0xf]  ;;  %v646_v7 = vor.u32 %v767_v62, %v643_v1  ;;  %v749_v8 = vld [vmem:[#allocation2 + $0x24] sm:$0xf] }
  0x17   :  { %299 = vmatpush.bf16.msra.mxu2 %v586_v50  ;;  %v766_v5 = vld [vmem:[#allocation2 + $0xa4] sm:$0xf0]  ;;  %v571_v9 = vld [vmem:[#allocation2 + $0x28] sm:$0xf0]  ;;  %v570_v10 = vor.u32 %v750_v3, %v569_v2  ;;  %v765_v12 = vld [vmem:[#allocation2 + $0xa4] sm:$0xf] }
  0x18   :  { %312 = vmatpush.bf16.msra.mxu3 %v650_v51  ;;  %v634_v11 = vor.u32 %v766_v5, %v633_v4  ;;  %v635_v13 = vld [vmem:[#allocation2 + $0xa8] sm:$0xf0]  ;;  %v574_v14 = vor.u32 %v749_v8, %v571_v9  ;;  %v561_v16 = vld [vmem:[#allocation2 + $0x10] sm:$0xf]  ;;  %v748_v17 = vld [vmem:[#allocation2 + $0x14] sm:$0xf0] }
  0x19   :  { %v638_v15 = vor.u32 %v765_v12, %v635_v13  ;;  %v625_v18 = vld [vmem:[#allocation2 + $0x90] sm:$0xf]  ;;  %v562_v19 = vor.u32 %v748_v17, %v561_v16  ;;  %v764_v20 = vld [vmem:[#allocation2 + $0x94] sm:$0xf0]  ;;  %v747_v21 = vld [vmem:[#allocation2 + $0x14] sm:$0xf] }
  0x1a   :  { %325 = vmatpush.bf16.msrb.mxu0 %v590_v58  ;;  %338 = vmatpush.bf16.msrb.mxu1 %v654_v59  ;;  %v563_v22 = vld [vmem:[#allocation2 + $0x18] sm:$0xf0]  ;;  %v626_v23 = vor.u32 %v764_v20, %v625_v18  ;;  %v763_v25 = vld [vmem:[#allocation2 + $0x94] sm:$0xf]  ;;  %v553_v28 = vld [vmem:[#allocation2] sm:$0xf] }
  0x1b   :  { %300 = vmatpush.bf16.msra.mxu2 %v578_v63  ;;  %v566_v24 = vor.u32 %v747_v21, %v563_v22  ;;  %v627_v26 = vld [vmem:[#allocation2 + $0x98] sm:$0xf0]  ;;  %v746_v29 = vld [vmem:[#allocation2 + $0x4] sm:$0xf0]  ;;  %v617_v30 = vld [vmem:[#allocation2 + $0x80] sm:$0xf] }
  0x1c   :  { %313 = vmatpush.bf16.msra.mxu3 %v642_v0  ;;  %v630_v27 = vor.u32 %v763_v25, %v627_v26  ;;  %v554_v31 = vor.u32 %v746_v29, %v553_v28  ;;  %v762_v32 = vld [vmem:[#allocation2 + $0x84] sm:$0xf0]  ;;  %v745_v33 = vld [vmem:[#allocation2 + $0x4] sm:$0xf]  ;;  %v555_v34 = vld [vmem:[#allocation2 + $0x8] sm:$0xf0] }
  0x1d   :  { %v618_v35 = vor.u32 %v762_v32, %v617_v30  ;;  %v558_v36 = vor.u32 %v745_v33, %v555_v34  ;;  %v761_v37 = vld [vmem:[#allocation2 + $0x84] sm:$0xf]  ;;  %v619_v38 = vld [vmem:[#allocation2 + $0x88] sm:$0xf0]  ;;  %v792_v40 = vld [vmem:[%s986_s5 + $0x78] sm:$0xff]  ;;  %s531_s27 = sshll.u32 %s988_s7, 4  ;;  %s532_s27 = int_to_ptr.hbm [resolvable:$true] %s531_s27 }
  0x1e   :  { %326 = vmatpush.bf16.msrb.mxu0 %v582_v6  ;;  %339 = vmatpush.bf16.msrb.mxu1 %v646_v7  ;;  %v622_v39 = vor.u32 %v761_v37, %v619_v38  ;;  %v784_v41 = vld [vmem:[%s986_s5 + $0x38] sm:$0xff]  ;;  %v791_v42 = vld [vmem:[%s986_s5 + $0x70] sm:$0xff]  ;;  %v790_v44 = vld [vmem:[%s986_s5 + $0x68] sm:$0xff] }
  0x1f   :  { %301 = vmatpush.bf16.msra.mxu2 %v570_v10  ;;  %v783_v43 = vld [vmem:[%s986_s5 + $0x30] sm:$0xff]  ;;  %v782_v45 = vld [vmem:[%s986_s5 + $0x28] sm:$0xff]  ;;  %v789_v46 = vld [vmem:[%s986_s5 + $0x60] sm:$0xff] }
  0x20   :  { %314 = vmatpush.bf16.msra.mxu3 %v634_v11  ;;  %v781_v47 = vld [vmem:[%s986_s5 + $0x20] sm:$0xff]  ;;  %v788_v48 = vld [vmem:[%s986_s5 + $0x58] sm:$0xff]  ;;  %v787_v50 = vld [vmem:[%s986_s5 + $0x50] sm:$0xff] }
  0x21   :  { %v48_v49 = vld [vmem:[%s983_s2] sm:$0x3]  ;;  %v780_v63 = vld [vmem:[%s986_s5 + $0x18] sm:$0xff]  ;;  %v786_v0 = vld [vmem:[%s986_s5 + $0x48] sm:$0xff] }
  0x22   :  { %327 = vmatpush.bf16.msrb.mxu0 %v574_v14  ;;  %340 = vmatpush.bf16.msrb.mxu1 %v638_v15  ;;  %v50_v51 = vperm.slane %v48_v49, 0  ;;  %v51_v52 = vperm.slane %v48_v49, 1  ;;  %v779_v1 = vld [vmem:[%s986_s5 + $0x10] sm:$0xff]  ;;  %v785_v2 = vld [vmem:[%s986_s5 + $0x40] sm:$0xff]  ;;  %v778_v3 = vld [vmem:[%s986_s5 + $0x8] sm:$0xff] }
  0x23   :  { %302 = vmatpush.bf16.msra.mxu2 %v562_v19  ;;  %v777_v4 = vld [vmem:[%s986_s5] sm:$0xff] }
  0x24   :  { %315 = vmatpush.bf16.msra.mxu3 %v626_v23  ;;  %v130_v5 = vld [vmem:[%s985_s4] sm:$0x3] }
  0x25   :  { %v133_v6 = vperm.slane %v130_v5, 1  ;;  %v132_v11 = vperm.slane %v130_v5, 0  ;;  %v797_v25 = vld [vmem:[%s987_s6] ss:$0 sm:$0xff]  ;;  %s857_s6 = smov [#allocation5]  }
  0x26   :  { %328 = vmatpush.bf16.msrb.mxu0 %v566_v24  ;;  %341 = vmatpush.bf16.msrb.mxu1 %v630_v27  ;;  %s529_s24 = sshll.u32 %s857_s6, 4  ;;  %s530_s24 = int_to_ptr.vmem [resolvable:$true] %s529_s24 }
  0x27   :  { %303 = vmatpush.bf16.msra.mxu2 %v554_v31 }
  0x28   :  { %316 = vmatpush.bf16.msra.mxu3 %v618_v35 }
  0x2a   :  { %329 = vmatpush.bf16.msrb.mxu0 %v558_v36  ;;  %342 = vmatpush.bf16.msrb.mxu1 %v622_v39 }
  0x2b   :  { %484 = vmatpush.bf16.msrb.mxu2 %v784_v41 }
  0x2c   :  { %497 = vmatpush.bf16.msrb.mxu3 %v792_v40 }
  0x2f   :  { %485 = vmatpush.bf16.msrb.mxu2 %v783_v43 }
  0x30   :  { %498 = vmatpush.bf16.msrb.mxu3 %v791_v42 }
  0x33   :  { %486 = vmatpush.bf16.msrb.mxu2 %v782_v45 }
  0x34   :  { %499 = vmatpush.bf16.msrb.mxu3 %v790_v44 }
  0x37   :  { %487 = vmatpush.bf16.msrb.mxu2 %v781_v47 }
  0x38   :  { %500 = vmatpush.bf16.msrb.mxu3 %v789_v46 }
  0x3b   :  { %488 = vmatpush.bf16.msrb.mxu2 %v780_v63 }
  0x3c   :  { %501 = vmatpush.bf16.msrb.mxu3 %v788_v48 }
  0x3f   :  { %489 = vmatpush.bf16.msrb.mxu2 %v779_v1 }
  0x40   :  { %502 = vmatpush.bf16.msrb.mxu3 %v787_v50 }
  0x43   :  { %490 = vmatpush.bf16.msrb.mxu2 %v778_v3 }
  0x44   :  { %503 = vmatpush.bf16.msrb.mxu3 %v786_v0 }
  0x47   :  { %491 = vmatpush.bf16.msrb.mxu2 %v777_v4 }
  0x48   :  { %504 = vmatpush.bf16.msrb.mxu3 %v785_v2 }
  0x8a   :  { %v77_v53 = vpop.f32.mrf.mxu0  ;;  %v90_v55 = vpop.f32.mrf.mxu1 }
  0x8b   :  { %v78_v54 = vadd.f32 %v77_v53, %v50_v51  ;;  %v91_v56 = vadd.f32 %v90_v55, %v51_v52 }
  0x8d   :  { %v94_v57 = vmax.f32 %v78_v54, 0.0  ;;  %v95_v58 = vmax.f32 %v91_v56, 0.0 }
  0x8f   :  { %v96_v59 = vpack.c.bf16 %v94_v57, %v94_v57  ;;  %v97_v60 = vpack.c.bf16 %v95_v58, %v95_v58 }
  0x91   :  { %304 = vmatmul.bf16.vlgmr.msra.gmra.mxu2 %v96_v59  ;;  %330 = vmatmul.bf16.vlgmr.msrb.gmra.mxu0 %v96_v59 }
  0x92   :  { %317 = vmatmul.bf16.vlgmr.msra.gmra.mxu3 %v97_v60  ;;  %343 = vmatmul.bf16.vlgmr.msrb.gmra.mxu1 %v97_v60  ;;  %v79_v61 = vpop.f32.mrf.mxu0  ;;  %v92_v62 = vpop.f32.mrf.mxu1 }
 0x10e   :  { %v331_v7 = vpop.f32.mrf.mxu0 }
 0x10f   :  { %v332_v8 = vadd.f32 %v331_v7, %v133_v6  ;;  %v344_v9 = vpop.f32.mrf.mxu1 }
 0x111   :  { %v345_v10 = vadd.f32 %v344_v9, %v332_v8 }
 0x113   :  { %v349_v12 = vmax.f32 %v345_v10, 0.0 }
 0x114   :  { %v305_v13 = vpop.f32.mrf.mxu2 }
 0x115   :  { %v351_v14 = vpack.c.bf16 %v349_v12, %v349_v12  ;;  %v306_v15 = vadd.f32 %v305_v13, %v132_v11  ;;  %v318_v16 = vpop.f32.mrf.mxu3 }
 0x116   :  { %v333_v17 = vpop.f32.mrf.mxu0 }
 0x117   :  { %v319_v18 = vadd.f32 %v318_v16, %v306_v15  ;;  %v346_v19 = vpop.f32.mrf.mxu1  ;;  %505 = vmatmul.bf16.vlgmr.msrb.gmra.mxu3 %v351_v14 }
 0x119   :  { %v348_v20 = vmax.f32 %v319_v18, 0.0 }
 0x11b   :  { %v350_v21 = vpack.c.bf16 %v348_v20, %v348_v20 }
 0x11c   :  { %v307_v22 = vpop.f32.mrf.mxu2 }
 0x11d   :  { %v320_v23 = vpop.f32.mrf.mxu3  ;;  %492 = vmatmul.bf16.vlgmr.msrb.gmra.mxu2 %v350_v21 }
 0x19a   :  { %v506_v24 = vpop.f32.mrf.mxu3 }
 0x1a0   :  { %v493_v26 = vpop.f32.mrf.mxu2 }
 0x1a1   :  { %v494_v27 = vadd.f32 %v797_v25, %v493_v26 }
 0x1a2   :  { %v508_v28 = vpop.f32.mrf.mxu3 }
 0x1a3   :  { %v507_v29 = vadd.f32 %v506_v24, %v494_v27 }
 0x1a5   :  { %v511_v30 = vsel %vm510_vm1, %v507_v29, -inf }
 0x1a6   :  { %512 = vmax.xlane.f32.xlu0 %v511_v30 }
 0x1a8   :  { %v495_v31 = vpop.f32.mrf.mxu2 }
 0x219   :  { %v513_v32 = vpop.xlane.xlu0 %512 }
 0x21a   :  { %v514_v33 = vsub.f32 %v507_v29, %v513_v32 }
 0x21c   :  { %v515_v34 = vmul.f32 1.442695, %v514_v33 }
 0x21e   :  { %798 = vpow2.f32 %v515_v34 }
 0x224   :  { %v799_v35 = vpop.eup %798 }
 0x225   :  { %v517_v36 = vsel %vm510_vm1, %v799_v35, 0.0 }
 0x226   :  { %518 = vadd.xlane.f32.xlu0 %v517_v36 }
 0x299   :  { %v519_v37 = vpop.xlane.xlu0 %518 }
 0x29a   :  { %800 = vlog2.f32 %v519_v37 }
 0x2a0   :  { %v801_v38 = vpop.eup %800 }
 0x2a1   :  { %v521_v39 = vmul.f32 0.6931472, %v801_v38 }
 0x2a3   :  { %v522_v40 = vsub.f32 %v514_v33, %v521_v39 }
 0x2a5   :  { %523 = vst.msk [vmem:[#allocation5] sm:$0x3] %vm510_vm1, %v522_v40 }
 0x2a6   :  { %534 = dma.vmem_to_hbm [thread:$0]  %s530_s24, 32, %s532_s27, [#allocation4]  }
 0x2a7   :  { %852 = dma.done.wait [#allocation4], 32  }
 0x2a8   :  { %853 = vsyncadd [#allocation4], 4294967264 }
 0x2a9   :  { %539 = vsyncpa [#allocation3], 1 }
 0x2aa   :  { %540 = vsyncpa [#allocation4], 1 }

</bundles_post_ra>
